<compile_context>
chip_gen: v7x
topology: tpu7x:2x2x1
jax: 0.10.0
libtpu: 0.0.40
codegen_flags: <defaults>
</compile_context>

<pallas_src>
import numpy as np

import jax
import jax.numpy as jnp
from jax.experimental import pallas as pl
from jax.experimental.pallas import tpu as pltpu  # noqa: F401  (TPU backend)


def _round_up(x, m):
    return (x + m - 1) // m * m


# ---------------------------------------------------------------------------
# Static layout of the packed block-diagonal weight slab / padded activations.
# ---------------------------------------------------------------------------
class _Layout:
    def __init__(self, dims1, dims2, dims3):
        d1, d2, d3 = list(dims1), list(dims2), list(dims3)
        assert len(d1) == 4 and len(d2) == 4 and len(d3) == 3
        self.d1, self.d2, self.d3 = d1, d2, d3

        self.in_tot = d1[0] + d2[0] + d3[0]
        self.r1 = _round_up(self.in_tot, 8)            # padded level-1 input width
        l1 = d1[1] + d2[1] + d3[1]
        l2 = d1[2] + d2[2] + d3[2]
        l3 = d1[3] + d2[3]
        self.wp = _round_up(max(l1, l2, l3), 8)        # common padded level width

        # Row offsets of each level's weight block and the bias rows in the slab.
        self.w2_row = self.r1
        self.w3_row = self.r1 + self.wp
        self.b_row = self.r1 + 2 * self.wp
        self.slab_rows = _round_up(self.b_row + 3, 8)

        # Final outputs: towers 1&2 from level 3, tower 3 from level 2.
        self.k1, self.k2, self.k3 = d1[3], d2[3], d3[2]
        self.k_tot = self.k1 + self.k2 + self.k3
        self.off3 = d1[2] + d2[2]                      # tower-3 column in level-2 layout
        self.out_pad = max(128, _round_up(self.k_tot, 128))


# ---------------------------------------------------------------------------
# Pack all per-layer (W, b) into one block-diagonal slab (done once at init).
# ---------------------------------------------------------------------------
def pack_weight_slab(layout, params1, params2, params3):
    """Each params{t} is a tuple of (W:(din,dout), b:(dout,)) per layer,
    with torch Linear semantics y = x @ W + b (W stored as (in, out))."""
    L = layout
    slab = np.zeros((L.slab_rows, L.wp), dtype=np.float32)

    def put(block_row, row_off, col_off, w, b, bias_row):
        w = np.asarray(w, np.float32)
        b = np.asarray(b, np.float32)
        din, dout = w.shape
        slab[block_row + row_off: block_row + row_off + din,
             col_off: col_off + dout] = w
        slab[bias_row, col_off: col_off + dout] = b

    d1, d2, d3 = L.d1, L.d2, L.d3
    # Level 1: input layout [x1 | x2 | x3], output layout [h1 | h2 | h3].
    put(0, 0,             0,             *params1[0], L.b_row + 0)
    put(0, d1[0],         d1[1],         *params2[0], L.b_row + 0)
    put(0, d1[0] + d2[0], d1[1] + d2[1], *params3[0], L.b_row + 0)
    # Level 2: input = level-1 output layout, output layout [h1 | h2 | h3_final].
    put(L.w2_row, 0,             0,             *params1[1], L.b_row + 1)
    put(L.w2_row, d1[1],         d1[2],         *params2[1], L.b_row + 1)
    put(L.w2_row, d1[1] + d2[1], d1[2] + d2[2], *params3[1], L.b_row + 1)
    # Level 3: towers 1 & 2 only (tower 3 finished at level 2).
    put(L.w3_row, 0,     0,     *params1[2], L.b_row + 2)
    put(L.w3_row, d1[2], d1[3], *params2[2], L.b_row + 2)
    return jnp.asarray(slab)


# ---------------------------------------------------------------------------
# Fused Pallas kernel: 3 block-diagonal matmul + tanh levels, one launch.
# ---------------------------------------------------------------------------
def _make_kernel(layout):
    L = layout
    r1, wp, b_row = L.r1, L.wp, L.b_row
    k12, k3, off3 = L.k1 + L.k2, L.k3, L.off3
    tail_pad = L.out_pad - L.k_tot

    def kernel(x_ref, w_ref, o_ref):
        f32 = jnp.float32
        x = x_ref[...]                                               # (Np, r1)
        # Level 1: all three towers, one block-diagonal matmul + tanh.
        h1 = jnp.tanh(
            jnp.dot(x, w_ref[:r1, :], preferred_element_type=f32)
            + w_ref[b_row:b_row + 1, :])
        # Level 2: all three towers (tower 3's final activation lands here).
        h2 = jnp.tanh(
            jnp.dot(h1, w_ref[r1:r1 + wp, :], preferred_element_type=f32)
            + w_ref[b_row + 1:b_row + 2, :])
        # Level 3: towers 1 & 2 only (tower-3 rows of this block are zero).
        h3 = jnp.tanh(
            jnp.dot(h2, w_ref[r1 + wp:r1 + 2 * wp, :], preferred_element_type=f32)
            + w_ref[b_row + 2:b_row + 3, :])
        # One lane-dense, full-width store; wrapper slices towers outside.
        parts = [h3[:, :k12], h2[:, off3:off3 + k3]]
        if tail_pad > 0:
            parts.append(jnp.zeros((x.shape[0], tail_pad), f32))
        o_ref[...] = jnp.concatenate(parts, axis=1)

    return kernel


def build_forward(layout):
    L = layout
    kernel = _make_kernel(L)

    @jax.jit
    def forward(w_slab, x1, x2, x3):
        n = x1.shape[0]
        n_pad = _round_up(max(n, 1), 8)
        x = jnp.concatenate([x1, x2, x3], axis=1).astype(jnp.float32)
        x = jnp.pad(x, ((0, n_pad - n), (0, L.r1 - L.in_tot)))

        out = pl.pallas_call(
            kernel,
            out_shape=jax.ShapeDtypeStruct((n_pad, L.out_pad), jnp.float32),
            in_specs=[
                pl.BlockSpec((n_pad, L.r1), lambda: (0, 0)),
                pl.BlockSpec((L.slab_rows, L.wp), lambda: (0, 0)),
            ],
            out_specs=pl.BlockSpec((n_pad, L.out_pad), lambda: (0, 0)),
        )(x, w_slab)

        out = out[:n]
        return (out[:, :L.k1],
                out[:, L.k1:L.k1 + L.k2],
                out[:, L.k1 + L.k2:L.k_tot])

    return forward


# ---------------------------------------------------------------------------
# Parameter init (xavier_uniform weights, zero biases — matches module spec)
# ---------------------------------------------------------------------------
def xavier_uniform(key, fan_in, fan_out):
    bound = float(np.sqrt(6.0 / (fan_in + fan_out)))
    # Stored as (fan_in, fan_out) == torch weight (out, in) transposed.
    return jax.random.uniform(key, (fan_in, fan_out),
                              minval=-bound, maxval=bound, dtype=jnp.float32)


def make_tower_params(key, dims):
    params = []
    for i in range(len(dims) - 1):
        key, sub = jax.random.split(key)
        w = xavier_uniform(sub, dims[i], dims[i + 1])
        b = jnp.zeros((dims[i + 1],), dtype=jnp.float32)
        params.append((w, b))
    return tuple(params)


# ---------------------------------------------------------------------------
# SDGCCA_3_M: three towers of (Linear + Tanh) layers (forward only)
# ---------------------------------------------------------------------------
class SDGCCA3M:
    def __init__(self, m1_dims, m2_dims, m3_dims, top_k, key):
        self.layout = _Layout(m1_dims, m2_dims, m3_dims)
        k1, k2, k3 = jax.random.split(key, 3)
        self.raw_params = (
            make_tower_params(k1, m1_dims),   # 3 Linear+Tanh layers
            make_tower_params(k2, m2_dims),   # 3 Linear+Tanh layers
            make_tower_params(k3, m3_dims),   # 2 Linear+Tanh layers
        )
        self.w_slab = pack_weight_slab(self.layout, *self.raw_params)
        self._forward = build_forward(self.layout)
        self.top_k = top_k
        # TODO(synk): cal_loss / predict rely on SVD, QR, pinverse and
        # data-dependent nn.Parameter creation — no clean Pallas equivalent;
        # only the forward pass is implemented here.

    def forward(self, x1, x2, x3):
        return self._forward(self.w_slab, x1, x2, x3)


# ---------------------------------------------------------------------------
# Pure-JAX reference (unfused, per-layer) for correctness check
# ---------------------------------------------------------------------------
def _ref_tower(x, params):
    h = x
    for w, b in params:
        h = jnp.tanh(h @ w + b)
    return h


def _ref_forward(params, x1, x2, x3):
    return (_ref_tower(x1, params[0]),
            _ref_tower(x2, params[1]),
            _ref_tower(x3, params[2]))


# ---------------------------------------------------------------------------
if __name__ == "__main__":
    key = jax.random.PRNGKey(0)
    k_params, kx1, kx2, kx3 = jax.random.split(key, 4)

    batch = 8
    m1_embedding_list = [32, 24, 16, 8]   # d1 -> ... -> bar(d1)
    m2_embedding_list = [48, 32, 16, 8]
    m3_embedding_list = [20, 16, 8]
    top_k = 2

    model = SDGCCA3M(m1_embedding_list, m2_embedding_list, m3_embedding_list,
                     top_k, k_params)

    x1 = jax.random.normal(kx1, (batch, m1_embedding_list[0]), dtype=jnp.float32)
    x2 = jax.random.normal(kx2, (batch, m2_embedding_list[0]), dtype=jnp.float32)
    x3 = jax.random.normal(kx3, (batch, m3_embedding_list[0]), dtype=jnp.float32)

    out1, out2, out3 = model.forward(x1, x2, x3)
    jax.block_until_ready((out1, out2, out3))

    # Shape / sanity checks.
    assert out1.shape == (batch, m1_embedding_list[-1])
    assert out2.shape == (batch, m2_embedding_list[-1])
    assert out3.shape == (batch, m3_embedding_list[-1])
    assert bool(jnp.all(jnp.isfinite(out1)))
    assert bool(jnp.all(jnp.isfinite(out2)))
    assert bool(jnp.all(jnp.isfinite(out3)))

    # Numerical check against the pure-JAX per-layer reference (also validates
    # the block-diagonal weight packing).
    r1, r2, r3 = _ref_forward(model.raw_params, x1, x2, x3)
    assert bool(jnp.allclose(out1, r1, atol=2e-5, rtol=2e-5))
    assert bool(jnp.allclose(out2, r2, atol=2e-5, rtol=2e-5))
    assert bool(jnp.allclose(out3, r3, atol=2e-5, rtol=2e-5))

    print("KERNEL_OK")
</pallas_src>

<mosaic_0001>
module attributes {stable_mosaic.version = 11 : i64} {
  func.func @kernel(%arg0: memref<8x104xf32, #tpu.memory_space<vmem>>, %arg1: memref<256x72xf32, #tpu.memory_space<vmem>>, %arg2: memref<8x128xf32, #tpu.memory_space<vmem>>) attributes {dimension_semantics = [], scalar_prefetch = 0 : i64, scratch_operands = 0 : i64, tpu.core_type = #tpu.core_type<tc>} {
    %c0 = arith.constant 0 : index
    %c0_0 = arith.constant 0 : index
    %0 = vector.load %arg0[%c0, %c0_0] : memref<8x104xf32, #tpu.memory_space<vmem>>, vector<8x104xf32>
    %c0_1 = arith.constant 0 : index
    %c0_2 = arith.constant 0 : index
    %1 = vector.load %arg1[%c0_1, %c0_2] : memref<256x72xf32, #tpu.memory_space<vmem>>, vector<104x72xf32>
    %cst = arith.constant dense<0.000000e+00> : vector<8x72xf32>
    %2 = tpu.matmul %0, %1, %cst {dimension_numbers = #tpu.dot_dimension_numbers<[1], [0], [0], [1], [0, 0, 1, 1], [], []>} : vector<8x104xf32>, vector<104x72xf32>, vector<8x72xf32> -> vector<8x72xf32>
    %c248 = arith.constant 248 : index
    %c0_3 = arith.constant 0 : index
    %3 = vector.load %arg1[%c248, %c0_3] : memref<256x72xf32, #tpu.memory_space<vmem>>, vector<1x72xf32>
    %4 = vector.broadcast %3 : vector<1x72xf32> to vector<8x72xf32>
    %5 = arith.addf %2, %4 : vector<8x72xf32>
    %6 = math.tanh %5 : vector<8x72xf32>
    %c104 = arith.constant 104 : index
    %c0_4 = arith.constant 0 : index
    %7 = vector.load %arg1[%c104, %c0_4] : memref<256x72xf32, #tpu.memory_space<vmem>>, vector<72x72xf32>
    %cst_5 = arith.constant dense<0.000000e+00> : vector<8x72xf32>
    %8 = tpu.matmul %6, %7, %cst_5 {dimension_numbers = #tpu.dot_dimension_numbers<[1], [0], [0], [1], [0, 0, 1, 1], [], []>} : vector<8x72xf32>, vector<72x72xf32>, vector<8x72xf32> -> vector<8x72xf32>
    %c249 = arith.constant 249 : index
    %c0_6 = arith.constant 0 : index
    %9 = vector.load %arg1[%c249, %c0_6] : memref<256x72xf32, #tpu.memory_space<vmem>>, vector<1x72xf32>
    %10 = vector.broadcast %9 : vector<1x72xf32> to vector<8x72xf32>
    %11 = arith.addf %8, %10 : vector<8x72xf32>
    %12 = math.tanh %11 : vector<8x72xf32>
    %c176 = arith.constant 176 : index
    %c0_7 = arith.constant 0 : index
    %13 = vector.load %arg1[%c176, %c0_7] : memref<256x72xf32, #tpu.memory_space<vmem>>, vector<72x72xf32>
    %cst_8 = arith.constant dense<0.000000e+00> : vector<8x72xf32>
    %14 = tpu.matmul %12, %13, %cst_8 {dimension_numbers = #tpu.dot_dimension_numbers<[1], [0], [0], [1], [0, 0, 1, 1], [], []>} : vector<8x72xf32>, vector<72x72xf32>, vector<8x72xf32> -> vector<8x72xf32>
    %c250 = arith.constant 250 : index
    %c0_9 = arith.constant 0 : index
    %15 = vector.load %arg1[%c250, %c0_9] : memref<256x72xf32, #tpu.memory_space<vmem>>, vector<1x72xf32>
    %16 = vector.broadcast %15 : vector<1x72xf32> to vector<8x72xf32>
    %17 = arith.addf %14, %16 : vector<8x72xf32>
    %18 = math.tanh %17 : vector<8x72xf32>
    %19 = vector.extract_strided_slice %18 {offsets = [0, 0], sizes = [8, 16], strides = [1, 1]} : vector<8x72xf32> to vector<8x16xf32>
    %20 = vector.extract_strided_slice %12 {offsets = [0, 32], sizes = [8, 8], strides = [1, 1]} : vector<8x72xf32> to vector<8x8xf32>
    %cst_10 = arith.constant 0.000000e+00 : f32
    %21 = vector.broadcast %cst_10 : f32 to vector<8x104xf32>
    %22 = tpu.concatenate %19, %20, %21 in 1 : vector<8x16xf32>, vector<8x8xf32>, vector<8x104xf32> -> vector<8x128xf32>
    %c0_11 = arith.constant 0 : index
    %c0_12 = arith.constant 0 : index
    %23 = vector.load %arg2[%c0_11, %c0_12] : memref<8x128xf32, #tpu.memory_space<vmem>>, vector<8x128xf32>
    tpu.vector_store %arg2[%c0_11, %c0_12], %22 {strides = array<i32>} : memref<8x128xf32, #tpu.memory_space<vmem>>, vector<8x128xf32>,
    return
  }
}

</mosaic_0001>

<bundles_post_ra>
// kernel: forward.1
= control target key start
LH: loop header
LB: loop body
LE: loop exit
PB: predicated region body
PF: predicated region fallthrough
CT: control target
= control target key end

     0   :  { %v457_v0 = vmov 0.0|0.0   ;;  %vm458_vm0 = vmmov 0   ;;  %v459_v4 = vmov 0.0   ;;  %vm30_vm1 = vcmask 850944   ;;  %s460_s19 = smov 112   ;;  %s609_s1 = inlined_call_operand.vmem [shape: f32[256,72], index: 1, kind: input, shape index: {}]   ;;  %s610_s0 = inlined_call_operand.vmem [shape: f32[8,104], index: 0, kind: input, shape index: {}]   ;;  %s611_s2 = inlined_call_operand.vmem [shape: f32[8,128], index: 2, kind: output, shape index: {}]  }
   0x1   :  { %405 = vmatprep.subr.bf16.mxu0 %v457_v0  ;;  %v12_v1 = vld [vmem:[%s609_s1] sm:$0xff]  ;;  %v13_v2 = vld [vmem:[%s609_s1 + $0x8] sm:$0xff]  ;;  %v14_v3 = vld [vmem:[%s609_s1 + $0x10] sm:$0xff]  ;;  %360 = vmatprep.mubr.msk.f32.mxu0 %vm458_vm0, %v459_v4  ;;  %vm119_vm2 = vcmask 588800   ;;  %vm285_vm3 = vcmask 130048   ;;  %vm287_vm4 = vcmask 195584  }
   0x2   :  { %v406_v5 = vpack.c.bf16 %v13_v2, %v12_v1  ;;  %v15_v6 = vld [vmem:[%s609_s1 + $0x18] sm:$0xff]  ;;  %423 = vmatprep.subr.bf16.mxu1 %v457_v0  ;;  %381 = vmatprep.mubr.msk.f32.mxu1 %vm458_vm0, %v459_v4  ;;  %v16_v8 = vld [vmem:[%s609_s1 + $0x20] sm:$0xff]  ;;  %v17_v9 = vld [vmem:[%s609_s1 + $0x28] sm:$0xff] }
   0x3   :  { %v409_v7 = vpack.c.bf16 %v15_v6, %v14_v3  ;;  %v105_v10 = vld [vmem:[%s609_s1 + $0x68] sm:$0xff]  ;;  %v106_v11 = vld [vmem:[%s609_s1 + $0x70] sm:$0xff]  ;;  %v412_v13 = vpack.c.bf16 %v17_v9, %v16_v8  ;;  %v19_v15 = vld [vmem:[%s609_s1 + $0x38] sm:$0xff] }
   0x4   :  { %407 = vmatpush3.bf16.msra.mxu0 %v406_v5  ;;  %v424_v12 = vpack.c.bf16 %v106_v11, %v105_v10  ;;  %v18_v14 = vld [vmem:[%s609_s1 + $0x30] sm:$0xff]  ;;  %v20_v17 = vld [vmem:[%s609_s1 + $0x40] sm:$0xff]  ;;  %v21_v18 = vld [vmem:[%s609_s1 + $0x48] sm:$0xff] }
   0x5   :  { %408 = vmatprep.subr.bf16.mxu0 %v457_v0  ;;  %v415_v16 = vpack.c.bf16 %v19_v15, %v18_v14  ;;  %v418_v19 = vpack.c.bf16 %v21_v18, %v20_v17  ;;  %v22_v20 = vld [vmem:[%s609_s1 + $0x50] sm:$0xff]  ;;  %v23_v21 = vld [vmem:[%s609_s1 + $0x58] sm:$0xff]  ;;  %v24_v23 = vld [vmem:[%s609_s1 + $0x60] sm:$0xff] }
   0x6   :  { %425 = vmatpush3.bf16.msra.mxu1 %v424_v12  ;;  %v421_v22 = vpack.c.bf16 %v23_v21, %v22_v20  ;;  %v11_v24 = vld [vmem:[%s610_s0] sm:$0xff]  ;;  %v107_v25 = vld [vmem:[%s609_s1 + $0x78] sm:$0xff]  ;;  %v109_v28 = vld [vmem:[%s609_s1 + $0x88] sm:$0xff] }
   0x7   :  { %426 = vmatprep.subr.bf16.mxu1 %v457_v0  ;;  %v108_v26 = vld [vmem:[%s609_s1 + $0x80] sm:$0xff]  ;;  %v110_v29 = vld [vmem:[%s609_s1 + $0x90] sm:$0xff]  ;;  %v111_v31 = vld [vmem:[%s609_s1 + $0x98] sm:$0xff] }
   0x8   :  { %410 = vmatpush3.bf16.msra.mxu0 %v409_v7  ;;  %v427_v27 = vpack.c.bf16 %v108_v26, %v107_v25  ;;  %v430_v30 = vpack.c.bf16 %v110_v29, %v109_v28  ;;  %v112_v32 = vld [vmem:[%s609_s1 + $0xa0] sm:$0xff]  ;;  %v113_v34 = vld [vmem:[%s609_s1 + $0xa8] sm:$0xff]  ;;  %v294_v35 = vld [vmem:[%s609_s1 + $0xf8] ss:$0 sm:$0xff] }
   0x9   :  { %411 = vmatprep.subr.bf16.mxu0 %v457_v0  ;;  %v433_v33 = vpack.c.bf16 %v112_v32, %v111_v31  ;;  %v194_v39 = vld [vmem:[%s609_s1 + $0xb0] sm:$0xff]  ;;  %v195_v40 = vld [vmem:[%s609_s1 + $0xb8] sm:$0xff]  ;;  %v196_v43 = vld [vmem:[%s609_s1 + $0xc0] sm:$0xff] }
   0xa   :  { %428 = vmatpush3.bf16.msra.mxu1 %v427_v27  ;;  %v436_v41 = vpack.c.bf16 %v195_v40, %v194_v39  ;;  %v197_v44 = vld [vmem:[%s609_s1 + $0xc8] sm:$0xff]  ;;  %v198_v46 = vld [vmem:[%s609_s1 + $0xd0] sm:$0xff]  ;;  %v199_v47 = vld [vmem:[%s609_s1 + $0xd8] sm:$0xff] }
   0xb   :  { %429 = vmatprep.subr.bf16.mxu1 %v457_v0  ;;  %v439_v45 = vpack.c.bf16 %v197_v44, %v196_v43  ;;  %v442_v48 = vpack.c.bf16 %v199_v47, %v198_v46  ;;  %v200_v49 = vld [vmem:[%s609_s1 + $0xe0] sm:$0xff]  ;;  %v201_v50 = vld [vmem:[%s609_s1 + $0xe8] sm:$0xff]  ;;  %v202_v52 = vld [vmem:[%s609_s1 + $0xf0] sm:$0xff] }
   0xc   :  { %413 = vmatpush3.bf16.msra.mxu0 %v412_v13  ;;  %v445_v51 = vpack.c.bf16 %v201_v50, %v200_v49  ;;  %v296_v53 = vld [vmem:[%s609_s1 + $0xf9] ss:$0 sm:$0xff]  ;;  %v298_v58 = vld [vmem:[%s609_s1 + $0xfa] ss:$0 sm:$0xff] }
   0xd   :  { %414 = vmatprep.subr.bf16.mxu0 %v457_v0 }
   0xe   :  { %431 = vmatpush3.bf16.msra.mxu1 %v430_v30 }
   0xf   :  { %432 = vmatprep.subr.bf16.mxu1 %v457_v0 }
  0x10   :  { %416 = vmatpush3.bf16.msra.mxu0 %v415_v16 }
  0x11   :  { %417 = vmatprep.subr.bf16.mxu0 %v457_v0 }
  0x12   :  { %434 = vmatpush3.bf16.msra.mxu1 %v433_v33 }
  0x13   :  { %379 = vmatprep.subr.mxu1 %v459_v4 }
  0x14   :  { %419 = vmatpush3.bf16.msra.mxu0 %v418_v19 }
  0x15   :  { %420 = vmatprep.subr.bf16.mxu0 %v457_v0 }
  0x16   :  { %380 = vmatpush3.msra.mxu1 %v113_v34 }
  0x17   :  { %435 = vmatprep.subr.bf16.mxu1 %v457_v0 }
  0x18   :  { %422 = vmatpush3.bf16.msra.mxu0 %v421_v22 }
  0x19   :  { %358 = vmatprep.subr.mxu0 %v459_v4 }
  0x1c   :  { %359 = vmatpush3.msra.mxu0 %v24_v23 }
  0x1d   :  { %361 = vmatmul.mubr.msk.f32.vlgmr.msra.gmra.mrb[0].mxu0 %vm30_vm1, %v11_v24 }
  0xf0   :  { %v100_v36 = vpop.f32.mrb[0].mxu0 }
  0xf1   :  { %v101_v37 = vadd.f32 %v294_v35, %v100_v36  ;;  %v362_v38 = vpop.f32.mrb[1].mxu0 }
  0xf3   :  { %451 = vtanh.f32 %v101_v37 }
  0xfd   :  { %v452_v42 = vpop.eup %451 }
  0xfe   :  { %382 = vmatmul.mubr.msk.f32.vlgmr.msra.gmra.mrb[0].mxu1 %vm119_vm2, %v452_v42 }
  0xff   :  { %437 = vmatpush3.bf16.msra.mxu1 %v436_v41  ;;  %402 = vmatprep.mubr.msk.f32.mxu1 %vm458_vm0, %v459_v4 }
 0x100   :  { %438 = vmatprep.subr.bf16.mxu1 %v457_v0 }
 0x103   :  { %440 = vmatpush3.bf16.msra.mxu1 %v439_v45 }
 0x104   :  { %441 = vmatprep.subr.bf16.mxu1 %v457_v0 }
 0x107   :  { %443 = vmatpush3.bf16.msra.mxu1 %v442_v48 }
 0x108   :  { %444 = vmatprep.subr.bf16.mxu1 %v457_v0 }
 0x10b   :  { %446 = vmatpush3.bf16.msra.mxu1 %v445_v51 }
 0x10c   :  { %400 = vmatprep.subr.mxu1 %v459_v4 }
 0x10f   :  { %401 = vmatpush3.msra.mxu1 %v202_v52 }
 0x1d1   :  { %v189_v54 = vpop.f32.mrb[0].mxu1 }
 0x1d2   :  { %v190_v55 = vadd.f32 %v296_v53, %v189_v54  ;;  %v383_v56 = vpop.f32.mrb[1].mxu1 }
 0x1d4   :  { %453 = vtanh.f32 %v190_v55 }
 0x1de   :  { %v454_v57 = vpop.eup %453 }
 0x1df   :  { %403 = vmatmul.mubr.msk.f32.vlgmr.msra.gmra.mrb[2].mxu1 %vm119_vm2, %v454_v57  ;;  %282 = vrot.lane.b32.xlu0 %v454_v57, %s460_s19 }
 0x251   :  { %v283_v63 = vpop.permute.xlu0 %282 }
 0x2b2   :  { %v277_v59 = vpop.f32.mrb[2].mxu1 }
 0x2b3   :  { %v278_v60 = vadd.f32 %v298_v58, %v277_v59  ;;  %v404_v61 = vpop.f32.mrb[3].mxu1 }
 0x2b5   :  { %455 = vtanh.f32 %v278_v60 }
 0x2bf   :  { %v456_v62 = vpop.eup %455 }
 0x2c0   :  { %v286_v0 = vsel %vm285_vm3, %v456_v62, %v283_v63 }
 0x2c1   :  { %v288_v1 = vsel %vm287_vm4, %v286_v0, 0.0 }
 0x2c2   :  { %289 = vst [vmem:[%s611_s2] sm:$0xff] %v288_v1 }

</bundles_post_ra>
